<compile_context>
chip_gen: v7x
topology: tpu7x:2x2x1
jax: 0.10.0
libtpu: 0.0.40
codegen_flags: <defaults>
</compile_context>

<pallas_src>
import functools

import jax
import jax.numpy as jnp
from jax.experimental import pallas as pl
from jax.experimental.pallas import tpu as pltpu

GAMMA = 0.0001


def _round_up(x, m):
    return (x + m - 1) // m * m


def _loss_kernel(predict_ref, label_ref, shared_ref, private_ref, out_ref,
                 ce_acc, gram_s_acc, gram_p_acc, *, n_valid, row_tile, gamma):
    i = pl.program_id(0)

    @pl.when(i == 0)
    def _init():
        ce_acc[...] = jnp.zeros_like(ce_acc)
        gram_s_acc[...] = jnp.zeros_like(gram_s_acc)
        gram_p_acc[...] = jnp.zeros_like(gram_p_acc)

    # ---- cross-entropy partial (this row tile) ----
    logits = predict_ref[...].astype(jnp.float32)            # (tn, C)
    labels = label_ref[...]                                    # (tn, 1) int32
    tn, c = logits.shape

    row_ids = i * row_tile + jax.lax.broadcasted_iota(jnp.int32, (tn, 1), 0)
    row_valid = (row_ids < n_valid).astype(jnp.float32)        # (tn, 1), masks padded rows

    m = jnp.max(logits, axis=-1, keepdims=True)                # (tn, 1)
    shifted = logits - m
    lse = jnp.log(jnp.sum(jnp.exp(shifted), axis=-1, keepdims=True))   # (tn, 1)
    col_ids = jax.lax.broadcasted_iota(jnp.int32, (tn, c), 1)
    onehot = (col_ids == labels).astype(jnp.float32)           # (tn, C)
    picked = jnp.sum(onehot * shifted, axis=-1, keepdims=True)  # (tn, 1)
    # per-row -log p_label = lse - shifted[label]; no (tn, C) log_probs temporary
    ce_acc[...] += row_valid * (lse - picked)

    # ---- Gram accumulation: ||S P^T||_F^2 = sum((S^T S) * (P^T P)) ----
    # Zero-padded rows contribute nothing, so no mask is needed here.
    s = shared_ref[...].astype(jnp.float32)                    # (tn, D)
    p = private_ref[...].astype(jnp.float32)                   # (tn, D)
    gram_s_acc[...] += jax.lax.dot_general(
        s, s, (((0,), (0,)), ((), ())), preferred_element_type=jnp.float32)
    gram_p_acc[...] += jax.lax.dot_general(
        p, p, (((0,), (0,)), ((), ())), preferred_element_type=jnp.float32)

    # ---- finalize on last tile ----
    @pl.when(i == pl.num_programs(0) - 1)
    def _finalize():
        ce = jnp.sum(ce_acc[...]) / n_valid
        orth = jnp.sum(gram_s_acc[...] * gram_p_acc[...])
        out_ref[0, 0] = ce + gamma * orth


def loss_pallas(predict, label, shared_features, private_features,
                gamma=GAMMA, row_tile=256):
    n, c = predict.shape
    ns, d = shared_features.shape
    np_, dp = private_features.shape
    assert d == dp, "shared/private feature dims must match"

    # One common row-tile for all batch-like arrays; pad everything to a multiple of it.
    rows = max(n, ns, np_)
    tn = min(row_tile, _round_up(rows, 8))
    padded = _round_up(rows, tn)
    num_tiles = padded // tn

    def pad_rows(x, target):
        extra = target - x.shape[0]
        if extra == 0:
            return x
        return jnp.pad(x, ((0, extra),) + ((0, 0),) * (x.ndim - 1))

    predict_p = pad_rows(predict.astype(jnp.float32), padded)
    label_p = pad_rows(label.astype(jnp.int32).reshape(-1, 1), padded)
    shared_p = pad_rows(shared_features.astype(jnp.float32), padded)
    private_p = pad_rows(private_features.astype(jnp.float32), padded)

    kernel = functools.partial(_loss_kernel, n_valid=n, row_tile=tn, gamma=gamma)

    grid_spec = pltpu.PrefetchScalarGridSpec(
        num_scalar_prefetch=0,
        grid=(num_tiles,),
        in_specs=[
            pl.BlockSpec((tn, c), lambda i: (i, 0)),   # predict row tile
            pl.BlockSpec((tn, 1), lambda i: (i, 0)),   # labels row tile
            pl.BlockSpec((tn, d), lambda i: (i, 0)),   # shared row tile
            pl.BlockSpec((tn, d), lambda i: (i, 0)),   # private row tile
        ],
        out_specs=pl.BlockSpec((1, 1), lambda i: (0, 0),
                               memory_space=pltpu.MemorySpace.SMEM),
        scratch_shapes=[
            pltpu.VMEM((tn, 1), jnp.float32),   # per-row CE accumulator
            pltpu.VMEM((d, d), jnp.float32),    # S^T S accumulator
            pltpu.VMEM((d, d), jnp.float32),    # P^T P accumulator
        ],
    )

    out = pl.pallas_call(
        kernel,
        out_shape=jax.ShapeDtypeStruct((1, 1), jnp.float32),
        grid_spec=grid_spec,
        compiler_params=pltpu.CompilerParams(
            dimension_semantics=("arbitrary",),          # reduction axis (accumulators)
            vmem_limit_bytes=32 * 1024 * 1024,           # safe on v5e/v6e/v7x
        ),
    )(predict_p, label_p, shared_p, private_p)
    return out[0, 0]


def loss_ref(predict, label, shared_features, private_features, gamma=GAMMA):
    # pure-JAX reference mirroring the PyTorch module
    log_probs = jax.nn.log_softmax(predict, axis=-1)
    ce = -jnp.mean(jnp.take_along_axis(
        log_probs, label[:, None].astype(jnp.int32), axis=1))
    inner = shared_features @ private_features.T
    return ce + gamma * jnp.sum(inner ** 2)


if __name__ == "__main__":
    key = jax.random.PRNGKey(0)
    k1, k2, k3, k4 = jax.random.split(key, 4)

    # small, module-consistent shapes; private batch differs from predict/shared batch
    N, C, D, M = 20, 10, 24, 12
    predict = jax.random.normal(k1, (N, C), dtype=jnp.float32)
    label = jax.random.randint(k2, (N,), 0, C, dtype=jnp.int32)
    shared = jax.random.normal(k3, (N, D), dtype=jnp.float32)
    private = jax.random.normal(k4, (M, D), dtype=jnp.float32)

    ref = loss_ref(predict, label, shared, private)

    # multi-tile path (row_tile=8 -> 3 grid steps, padded rows masked)
    out_small = jax.block_until_ready(
        loss_pallas(predict, label, shared, private, row_tile=8))
    assert jnp.allclose(out_small, ref, rtol=1e-5, atol=1e-5), (out_small, ref)

    # default tiling (single tile at these shapes)
    out_default = jax.block_until_ready(
        loss_pallas(predict, label, shared, private))
    assert jnp.allclose(out_default, ref, rtol=1e-5, atol=1e-5), (out_default, ref)

    print("KERNEL_OK")
</pallas_src>

<mosaic_0001>
module attributes {stable_mosaic.version = 11 : i64} {
  func.func @_loss_kernel(%arg0: i32, %arg1: memref<8x10xf32, #tpu.memory_space<vmem>>, %arg2: memref<8x1xi32, #tpu.memory_space<vmem>>, %arg3: memref<8x24xf32, #tpu.memory_space<vmem>>, %arg4: memref<8x24xf32, #tpu.memory_space<vmem>>, %arg5: memref<1x1xf32, #tpu.memory_space<smem>>, %arg6: memref<8x1xf32, #tpu.memory_space<vmem>>, %arg7: memref<24x24xf32, #tpu.memory_space<vmem>>, %arg8: memref<24x24xf32, #tpu.memory_space<vmem>>) attributes {dimension_semantics = [#tpu.dimension_semantics<arbitrary>], iteration_bounds = array<i64: 3>, scalar_prefetch = 0 : i64, scratch_operands = 3 : i64, tpu.core_type = #tpu.core_type<tc>, window_params = [{transform_indices = @transform_0, window_bounds = array<i64: 8, 10>}, {transform_indices = @transform_1, window_bounds = array<i64: 8, 1>}, {transform_indices = @transform_2, window_bounds = array<i64: 8, 24>}, {transform_indices = @transform_3, window_bounds = array<i64: 8, 24>}, {transform_indices = @transform_4, window_bounds = array<i64: 1, 1>}]} {
    %c0_i32 = arith.constant 0 : i32
    %0 = arith.cmpi eq, %arg0, %c0_i32 : i32
    %1 = arith.extui %0 : i1 to i32
    %c0_i32_0 = arith.constant 0 : i32
    %2 = arith.cmpi ne, %1, %c0_i32_0 : i32
    scf.if %2 {
      %cst_25 = arith.constant 0.000000e+00 : f32
      %47 = vector.broadcast %cst_25 : f32 to vector<8x1xf32>
      %c0_26 = arith.constant 0 : index
      %c0_27 = arith.constant 0 : index
      %48 = vector.load %arg6[%c0_26, %c0_27] : memref<8x1xf32, #tpu.memory_space<vmem>>, vector<8x1xf32>
      tpu.vector_store %arg6[%c0_26, %c0_27], %47 {strides = array<i32>} : memref<8x1xf32, #tpu.memory_space<vmem>>, vector<8x1xf32>,
      %cst_28 = arith.constant 0.000000e+00 : f32
      %49 = vector.broadcast %cst_28 : f32 to vector<24x24xf32>
      %c0_29 = arith.constant 0 : index
      %c0_30 = arith.constant 0 : index
      %50 = vector.load %arg7[%c0_29, %c0_30] : memref<24x24xf32, #tpu.memory_space<vmem>>, vector<24x24xf32>
      tpu.vector_store %arg7[%c0_29, %c0_30], %49 {strides = array<i32>} : memref<24x24xf32, #tpu.memory_space<vmem>>, vector<24x24xf32>,
      %cst_31 = arith.constant 0.000000e+00 : f32
      %51 = vector.broadcast %cst_31 : f32 to vector<24x24xf32>
      %c0_32 = arith.constant 0 : index
      %c0_33 = arith.constant 0 : index
      %52 = vector.load %arg8[%c0_32, %c0_33] : memref<24x24xf32, #tpu.memory_space<vmem>>, vector<24x24xf32>
      tpu.vector_store %arg8[%c0_32, %c0_33], %51 {strides = array<i32>} : memref<24x24xf32, #tpu.memory_space<vmem>>, vector<24x24xf32>,
    } else {
    }
    %c0 = arith.constant 0 : index
    %c0_1 = arith.constant 0 : index
    %3 = vector.load %arg1[%c0, %c0_1] : memref<8x10xf32, #tpu.memory_space<vmem>>, vector<8x10xf32>
    %c0_2 = arith.constant 0 : index
    %c0_3 = arith.constant 0 : index
    %4 = vector.load %arg2[%c0_2, %c0_3] : memref<8x1xi32, #tpu.memory_space<vmem>>, vector<8x1xi32>
    %c8_i32 = arith.constant 8 : i32
    %5 = arith.muli %arg0, %c8_i32 : i32
    %6 = tpu.iota {dimensions = array<i32: 0>} : vector<8x1xi32>
    %7 = vector.broadcast %5 : i32 to vector<8x1xi32>
    %8 = arith.addi %7, %6 : vector<8x1xi32>
    %c20_i32 = arith.constant 20 : i32
    %9 = vector.broadcast %c20_i32 : i32 to vector<8x1xi32>
    %10 = arith.cmpi slt, %8, %9 : vector<8x1xi32>
    %11 = arith.extui %10 : vector<8x1xi1> to vector<8x1xi32>
    %12 = arith.sitofp %11 : vector<8x1xi32> to vector<8x1xf32>
    %cst = arith.constant dense<0xFF800000> : vector<8xf32>
    %13 = vector.multi_reduction <maximumf>, %3, %cst [1] : vector<8x10xf32> to vector<8xf32>
    %14 = vector.shape_cast %13 : vector<8xf32> to vector<8x1xf32>
    %15 = vector.broadcast %14 : vector<8x1xf32> to vector<8x10xf32>
    %16 = arith.subf %3, %15 : vector<8x10xf32>
    %17 = math.exp %16 : vector<8x10xf32>
    %cst_4 = arith.constant dense<0.000000e+00> : vector<8xf32>
    %18 = vector.multi_reduction <add>, %17, %cst_4 [1] : vector<8x10xf32> to vector<8xf32>
    %19 = vector.shape_cast %18 : vector<8xf32> to vector<8x1xf32>
    %20 = math.log %19 : vector<8x1xf32>
    %21 = tpu.iota {dimensions = array<i32: 1>} : vector<8x10xi32>
    %22 = vector.broadcast %4 : vector<8x1xi32> to vector<8x10xi32>
    %23 = arith.cmpi eq, %21, %22 : vector<8x10xi32>
    %24 = arith.extui %23 : vector<8x10xi1> to vector<8x10xi32>
    %25 = arith.sitofp %24 : vector<8x10xi32> to vector<8x10xf32>
    %26 = arith.mulf %25, %16 : vector<8x10xf32>
    %cst_5 = arith.constant dense<0.000000e+00> : vector<8xf32>
    %27 = vector.multi_reduction <add>, %26, %cst_5 [1] : vector<8x10xf32> to vector<8xf32>
    %28 = vector.shape_cast %27 : vector<8xf32> to vector<8x1xf32>
    %c0_6 = arith.constant 0 : index
    %c0_7 = arith.constant 0 : index
    %29 = vector.load %arg6[%c0_6, %c0_7] : memref<8x1xf32, #tpu.memory_space<vmem>>, vector<8x1xf32>
    %30 = arith.subf %20, %28 : vector<8x1xf32>
    %31 = arith.mulf %12, %30 : vector<8x1xf32>
    %32 = arith.addf %29, %31 : vector<8x1xf32>
    %c0_8 = arith.constant 0 : index
    %c0_9 = arith.constant 0 : index
    %33 = vector.load %arg6[%c0_8, %c0_9] : memref<8x1xf32, #tpu.memory_space<vmem>>, vector<8x1xf32>
    tpu.vector_store %arg6[%c0_8, %c0_9], %32 {strides = array<i32>} : memref<8x1xf32, #tpu.memory_space<vmem>>, vector<8x1xf32>,
    %c0_10 = arith.constant 0 : index
    %c0_11 = arith.constant 0 : index
    %34 = vector.load %arg3[%c0_10, %c0_11] : memref<8x24xf32, #tpu.memory_space<vmem>>, vector<8x24xf32>
    %c0_12 = arith.constant 0 : index
    %c0_13 = arith.constant 0 : index
    %35 = vector.load %arg4[%c0_12, %c0_13] : memref<8x24xf32, #tpu.memory_space<vmem>>, vector<8x24xf32>
    %c0_14 = arith.constant 0 : index
    %c0_15 = arith.constant 0 : index
    %36 = vector.load %arg7[%c0_14, %c0_15] : memref<24x24xf32, #tpu.memory_space<vmem>>, vector<24x24xf32>
    %cst_16 = arith.constant dense<0.000000e+00> : vector<24x24xf32>
    %37 = tpu.matmul %34, %34, %cst_16 {dimension_numbers = #tpu.dot_dimension_numbers<[0], [0], [1], [1], [0, 1, 1, 1], [], []>} : vector<8x24xf32>, vector<8x24xf32>, vector<24x24xf32> -> vector<24x24xf32>
    %38 = arith.addf %36, %37 : vector<24x24xf32>
    %c0_17 = arith.constant 0 : index
    %c0_18 = arith.constant 0 : index
    %39 = vector.load %arg7[%c0_17, %c0_18] : memref<24x24xf32, #tpu.memory_space<vmem>>, vector<24x24xf32>
    tpu.vector_store %arg7[%c0_17, %c0_18], %38 {strides = array<i32>} : memref<24x24xf32, #tpu.memory_space<vmem>>, vector<24x24xf32>,
    %c0_19 = arith.constant 0 : index
    %c0_20 = arith.constant 0 : index
    %40 = vector.load %arg8[%c0_19, %c0_20] : memref<24x24xf32, #tpu.memory_space<vmem>>, vector<24x24xf32>
    %cst_21 = arith.constant dense<0.000000e+00> : vector<24x24xf32>
    %41 = tpu.matmul %35, %35, %cst_21 {dimension_numbers = #tpu.dot_dimension_numbers<[0], [0], [1], [1], [0, 1, 1, 1], [], []>} : vector<8x24xf32>, vector<8x24xf32>, vector<24x24xf32> -> vector<24x24xf32>
    %42 = arith.addf %40, %41 : vector<24x24xf32>
    %c0_22 = arith.constant 0 : index
    %c0_23 = arith.constant 0 : index
    %43 = vector.load %arg8[%c0_22, %c0_23] : memref<24x24xf32, #tpu.memory_space<vmem>>, vector<24x24xf32>
    tpu.vector_store %arg8[%c0_22, %c0_23], %42 {strides = array<i32>} : memref<24x24xf32, #tpu.memory_space<vmem>>, vector<24x24xf32>,
    %c2_i32 = arith.constant 2 : i32
    %44 = arith.cmpi eq, %arg0, %c2_i32 : i32
    %45 = arith.extui %44 : i1 to i32
    %c0_i32_24 = arith.constant 0 : i32
    %46 = arith.cmpi ne, %45, %c0_i32_24 : i32
    scf.if %46 {
      %c0_25 = arith.constant 0 : index
      %c0_26 = arith.constant 0 : index
      %47 = vector.load %arg6[%c0_25, %c0_26] : memref<8x1xf32, #tpu.memory_space<vmem>>, vector<8x1xf32>
      %48 = vector.shape_cast %47 : vector<8x1xf32> to vector<1x8x1xf32>
      %cst_27 = arith.constant dense<0.000000e+00> : vector<1xf32>
      %49 = vector.multi_reduction <add>, %48, %cst_27 [1, 2] : vector<1x8x1xf32> to vector<1xf32>
      %50 = vector.shape_cast %49 : vector<1xf32> to vector<1x1x1xf32>
      %51 = vector.extract %50[0, 0, 0] : f32 from vector<1x1x1xf32>
      %cst_28 = arith.constant 2.000000e+01 : f32
      %52 = arith.divf %51, %cst_28 : f32
      %c0_29 = arith.constant 0 : index
      %c0_30 = arith.constant 0 : index
      %53 = vector.load %arg7[%c0_29, %c0_30] : memref<24x24xf32, #tpu.memory_space<vmem>>, vector<24x24xf32>
      %c0_31 = arith.constant 0 : index
      %c0_32 = arith.constant 0 : index
      %54 = vector.load %arg8[%c0_31, %c0_32] : memref<24x24xf32, #tpu.memory_space<vmem>>, vector<24x24xf32>
      %55 = arith.mulf %53, %54 : vector<24x24xf32>
      %56 = vector.shape_cast %55 : vector<24x24xf32> to vector<1x24x24xf32>
      %cst_33 = arith.constant dense<0.000000e+00> : vector<1xf32>
      %57 = vector.multi_reduction <add>, %56, %cst_33 [1, 2] : vector<1x24x24xf32> to vector<1xf32>
      %58 = vector.shape_cast %57 : vector<1xf32> to vector<1x1x1xf32>
      %59 = vector.extract %58[0, 0, 0] : f32 from vector<1x1x1xf32>
      %cst_34 = arith.constant 9.99999974E-5 : f32
      %60 = arith.mulf %cst_34, %59 : f32
      %61 = arith.addf %52, %60 : f32
      %c0_35 = arith.constant 0 : index
      %c0_36 = arith.constant 0 : index
      %62 = memref.load %arg5[%c0_35, %c0_36] : memref<1x1xf32, #tpu.memory_space<smem>>
      memref.store %61, %arg5[%c0_35, %c0_36] : memref<1x1xf32, #tpu.memory_space<smem>>
    } else {
    }
    return
  }
  func.func @transform_0(%arg0: i32) -> (i32, i32) {
    %c0_i32 = arith.constant 0 : i32
    %c0_i32_0 = arith.constant 0 : i32
    return %arg0, %c0_i32 : i32, i32
  }
  func.func @transform_1(%arg0: i32) -> (i32, i32) {
    %c0_i32 = arith.constant 0 : i32
    %c0_i32_0 = arith.constant 0 : i32
    return %arg0, %c0_i32 : i32, i32
  }
  func.func @transform_2(%arg0: i32) -> (i32, i32) {
    %c0_i32 = arith.constant 0 : i32
    %c0_i32_0 = arith.constant 0 : i32
    return %arg0, %c0_i32 : i32, i32
  }
  func.func @transform_3(%arg0: i32) -> (i32, i32) {
    %c0_i32 = arith.constant 0 : i32
    %c0_i32_0 = arith.constant 0 : i32
    return %arg0, %c0_i32 : i32, i32
  }
  func.func @transform_4(%arg0: i32) -> (i32, i32) {
    %c0_i32 = arith.constant 0 : i32
    %c0_i32_0 = arith.constant 0 : i32
    %c0_i32_1 = arith.constant 0 : i32
    return %c0_i32, %c0_i32_0 : i32, i32
  }
}

</mosaic_0001>

<bundles_post_ra>
// kernel: tpu_custom_call.1
= control target key start
LH: loop header
LB: loop body
LE: loop exit
PB: predicated region body
PF: predicated region fallthrough
CT: control target
= control target key end

     0   :  { %9 = vsyncpa [#allocation6], 0  ;;  %s811_s15 = smov 0   ;;  %s891_s0 = inlined_call_operand.vmem [shape: f32[24,10], index: 0, kind: input, shape index: {}]   ;;  %s892_s1 = inlined_call_operand.vmem [shape: s32[24,1], index: 1, kind: input, shape index: {}]   ;;  %s893_s2 = inlined_call_operand.vmem [shape: f32[24,24], index: 2, kind: input, shape index: {}]   ;;  %s894_s3 = inlined_call_operand.vmem [shape: f32[24,24], index: 3, kind: input, shape index: {}]   ;;  %s895_s4 = inlined_call_operand.hbm [shape: f32[1,1], index: 4, kind: output, shape index: {}]  }
   0x1 LB: > { %s817_s16 = sadd.s32 4294967295, %s779_s15   ;;  %p678_p0 = scmp.ge.s32.totalorder %s779_s15, 1  ;;  %s779_s15 = sphi %s811_s15, %s15_s15  }
   0x2   : > { %p184_p1 = scmp.lt.s32.totalorder %s779_s15, 4 }
   0x4   : > { %p185_p2 = pnand %p678_p0, %p184_p1 }
   0x5   : > { %p216_p3 = scmp.lt.s32.totalorder (!%p185_p2), %s817_s16, 2  ;;  %p683_p4 = scmp.ne.s32.totalorder (!%p185_p2), %s817_s16, 0 }
   0x6   : > { %188 = sbr.rel (%p185_p2) target bundleno = 622 (0x26e), region = 36 }
   0xd   : > { %s217_s17 = scalar_select %p216_p3, %s817_s16, 2 }
   0xe   : > { %235 = sbr.rel (%p683_p4) target bundleno = 21 (0x15), region = 40  ;;  %vm236_vm0 = vcmask (!%p683_p4), 7168   ;;  %vm238_vm1 = vcmask (!%p683_p4), 195584   ;;  %v781_v0 = vmov (!%p683_p4), 0.0  }
   0xf   : > { %s823_s18 = sshll.u32 %s217_s17, 3  ;;  %237 = vst.msk [vmem:[#allocation2] sm:$0xff] (!%p683_p4), %vm236_vm0, %v781_v0 }
  0x10   : > { %s219_s21 = scalar_lea.vmem %s891_s0, %s823_s18  ;;  %s223_s24 = scalar_lea.vmem %s892_s1, %s823_s18  ;;  %239 = vst.msk [vmem:[#allocation3] sm:$0xff] (!%p683_p4), %vm238_vm1, %v781_v0  ;;  %240 = vst.msk [vmem:[#allocation3 + $0x8] sm:$0xff] (!%p683_p4), %vm238_vm1, %v781_v0 }
  0x11   : > { %s227_s27 = scalar_lea.vmem %s893_s2, %s823_s18  ;;  %s231_s30 = scalar_lea.vmem %s894_s3, %s823_s18  ;;  %241 = vst.msk [vmem:[#allocation3 + $0x10] sm:$0xff] (!%p683_p4), %vm238_vm1, %v781_v0  ;;  %242 = vst.msk [vmem:[#allocation4] sm:$0xff] (!%p683_p4), %vm238_vm1, %v781_v0 }
  0x12   : > { %243 = vst.msk [vmem:[#allocation4 + $0x8] sm:$0xff] (!%p683_p4), %vm238_vm1, %v781_v0  ;;  %244 = vst.msk [vmem:[#allocation4 + $0x10] sm:$0xff] (!%p683_p4), %vm238_vm1, %v781_v0 }
  0x15 PF: > { %v285_v1 = vld [vmem:[%s227_s27] sm:$0xff]  ;;  %vm255_vm2 = vcmask 80896   ;;  %v782_v4 = vmov 0   ;;  %v783_v5 = vmov 0.0   ;;  %vm784_vm3 = vmmov 0   ;;  %s684_s7 = sshll.u32 %s817_s16, 3 }
  0x16   : > { %v245_v2 = vld [vmem:[%s219_s21] sm:$0xff]  ;;  %290 = vxpose.xlu0.b32.start.end [1/1] (short) (narrow) %v285_v1, 24  ;;  %751 = vset.pattern.permute.xlu1 %v782_v4  ;;  %vm322_vm4 = vcmask 64512   ;;  %v248_v11 = vlaneseq  ;;  %v250_v27 = vstv %s684_s7  ;;  %v279_v34 = vld [vmem:[#allocation2] sm:$0xff]  ;;  %vm283_vm7 = vcmask 7168   ;;  %p693_p5 = scmp.ne.s32.totalorder %s817_s16, 2 }
  0x17   : > { %v256_v3 = vsel %vm255_vm2, %v245_v2, -inf  ;;  %706 = vmatprep.subr.mxu0 %v783_v5  ;;  %708 = vmatprep.mubr.msk.f32.mxu0 %vm784_vm3, %v783_v5  ;;  %v286_v6 = vld [vmem:[%s231_s30] sm:$0xff]  ;;  %v287_v37 = vld [vmem:[#allocation3] sm:$0xff]  ;;  %vm415_vm8 = vcmask 195584   ;;  %v288_v41 = vld [vmem:[#allocation3 + $0x8] sm:$0xff] }
  0x18   : > { %257 = vmax.xlane.f32.xlu1 %v256_v3  ;;  %707 = vmatpush3.msra.mxu0 %v285_v1  ;;  %v246_v7 = vld [vmem:[%s223_s24] sm:$0xff]  ;;  %v268_v15 = vand.u32 127, %v248_v11  ;;  %v249_v26 = vshrl.u32 %v248_v11, 7  ;;  %v419_v49 = vld [vmem:[#allocation4] sm:$0xff] }
  0x19   : > { %717 = vmatprep.subr.mxu1 %v783_v5  ;;  %719 = vmatprep.mubr.msk.f32.mxu1 %vm784_vm3, %v783_v5  ;;  %v289_v45 = vld [vmem:[#allocation3 + $0x10] sm:$0xff]  ;;  %v420_v53 = vld [vmem:[#allocation4 + $0x8] sm:$0xff]  ;;  %v421_v57 = vld [vmem:[#allocation4 + $0x10] sm:$0xff] }
  0x1a   : > { %718 = vmatpush3.msra.mxu1 %v286_v6  ;;  %v251_v28 = vadd.s32 %v250_v27, %v249_v26 }
  0x1c   : > { %vm252_vm6 = vcmp.lt.s32.totalorder %v251_v28, 20 }
  0x1d   : > { %v685_v32 = vsel %vm252_vm6, 1.0, %v783_v5 }
  0x1f   : > { %422 = vxpose.xlu0.b32.start.end [1/1] (short) (narrow) %v286_v6, 24 }
  0x29   : > { %270 = vperm.xlu1 %751, %v246_v7  }
  0x48   : > { %752 = vset.pattern.permute.xlu0 %v782_v4 }
  0x96   : > { %v306_v8 = vpop.trf.xlu0 }
  0x97   : > { %709 = vmatmul.mubr.msk.f32.vlgmr.msra.gmra.mrb[0].mxu0 %vm322_vm4, %v306_v8 }
  0x98   : > { %711 = vmatprep.mubr.msk.f32.mxu0 %vm784_vm3, %v783_v5 }
  0x9a   : > { %v307_v9 = vpop.trf.xlu0 }
  0x9b   : > { %712 = vmatmul.mubr.msk.f32.gmra.mrb[2].mxu0 %vm322_vm4, %v307_v9 }
  0x9c   : > { %714 = vmatprep.mubr.msk.f32.mxu0 %vm784_vm3, %v783_v5 }
  0x9e   : > { %v308_v10 = vpop.trf.xlu0 }
  0x9f   : > { %715 = vmatmul.mubr.msk.f32.gmra.mrb[4].mxu0 %vm322_vm4, %v308_v10 }
  0xa2   : > { %v438_v12 = vpop.trf.xlu0 }
  0xa3   : > { %720 = vmatmul.mubr.msk.f32.vlgmr.msra.gmra.mrb[0].mxu1 %vm322_vm4, %v438_v12 }
  0xa4   : > { %722 = vmatprep.mubr.msk.f32.mxu1 %vm784_vm3, %v783_v5 }
  0xa5   : > { %v258_v13 = vpop.xlane.xlu1 %257 }
  0xa6   : > { %v259_v14 = vsub.f32 %v245_v2, %v258_v13  ;;  %v439_v16 = vpop.trf.xlu0 }
  0xa7   : > { %723 = vmatmul.mubr.msk.f32.gmra.mrb[2].mxu1 %vm322_vm4, %v439_v16 }
  0xa8   : > { %v260_v17 = vmul.f32 1.442695, %v259_v14  ;;  %725 = vmatprep.mubr.msk.f32.mxu1 %vm784_vm3, %v783_v5 }
  0xa9   : > { %v271_v18 = vpop.permute.xlu1 %270 }
  0xaa   : > { %753 = vpow2.f32 %v260_v17  ;;  %vm272_vm5 = vcmp.eq.s32.totalorder %v268_v15, %v271_v18  ;;  %v440_v19 = vpop.trf.xlu0 }
  0xab   : > { %v686_v20 = vsel %vm272_vm5, 1.0, %v783_v5  ;;  %726 = vmatmul.mubr.msk.f32.gmra.mrb[4].mxu1 %vm322_vm4, %v440_v19 }
  0xac   : > { %v275_v21 = vmul.f32 %v686_v20, %v259_v14 }
  0xae   : > { %v276_v22 = vsel %vm255_vm2, %v275_v21, 0.0 }
  0xaf   : > { %277 = vadd.xlane.f32.xlu1 %v276_v22 }
  0xb4   : > { %v754_v23 = vpop.eup %753 }
  0xb5   : > { %v262_v24 = vsel %vm255_vm2, %v754_v23, 0.0 }
  0xb6   : > { %263 = vadd.xlane.f32.xlu0 %v262_v24 }
 0x13c   : > { %v278_v30 = vpop.xlane.xlu1 %277 }
 0x143   : > { %v264_v25 = vpop.xlane.xlu0 %263 }
 0x144   : > { %755 = vlog2.f32 %v264_v25 }
 0x14e   : > { %v756_v29 = vpop.eup %755 }
 0x14f   : > { %v266_v31 = vmul.f32 0.6931472, %v756_v29 }
 0x151   : > { %v280_v33 = vsub.f32 %v266_v31, %v278_v30 }
 0x153   : > { %v281_v35 = vmul.f32 %v685_v32, %v280_v33 }
 0x155   : > { %v282_v36 = vadd.f32 %v281_v35, %v279_v34 }
 0x157   : > { %284 = vst.msk [vmem:[#allocation2] sm:$0xff] %vm283_vm7, %v282_v36 }
 0x15e   : > { %v553_v61 = vld [vmem:[#allocation2] sm:$0xff] (!%p693_p5) }
 0x15f   : > { %v554_v0 = vsel (!%p693_p5), %vm283_vm7, %v553_v61, 0.0 }
 0x160   : > { %555 = vadd.xlane.f32.xlu0 (!%p693_p5), %v554_v0 }
 0x16a   : > { %v398_v38 = vpop.f32.mrb[0].mxu0 }
 0x16b   : > { %v412_v39 = vadd.f32 %v398_v38, %v287_v37  ;;  %v710_v40 = vpop.f32.mrb[1].mxu0 }
 0x16d   : > { %416 = vst.msk [vmem:[#allocation3] sm:$0xff] %vm415_vm8, %v412_v39 }
 0x16e   : > { %v403_v42 = vpop.f32.mrb[2].mxu0 }
 0x16f   : > { %v413_v43 = vadd.f32 %v403_v42, %v288_v41  ;;  %v713_v44 = vpop.f32.mrb[3].mxu0 }
 0x171   : > { %417 = vst.msk [vmem:[#allocation3 + $0x8] sm:$0xff] %vm415_vm8, %v413_v43 }
 0x172   : > { %v408_v46 = vpop.f32.mrb[4].mxu0 }
 0x173   : > { %v414_v47 = vadd.f32 %v408_v46, %v289_v45  ;;  %v716_v48 = vpop.f32.mrb[5].mxu0 }
 0x174   : > { %v567_v62 = vld [vmem:[#allocation3] sm:$0xff] (!%p693_p5) }
 0x175   : > { %418 = vst.msk [vmem:[#allocation3 + $0x10] sm:$0xff] %vm415_vm8, %v414_v47 }
 0x176   : > { %v529_v50 = vpop.f32.mrb[0].mxu1 }
 0x177   : > { %v543_v51 = vadd.f32 %v529_v50, %v419_v49  ;;  %v721_v52 = vpop.f32.mrb[1].mxu1 }
 0x178   : > { %v568_v63 = vld [vmem:[#allocation3 + $0x8] sm:$0xff] (!%p693_p5) }
 0x179   : > { %546 = vst.msk [vmem:[#allocation4] sm:$0xff] %vm415_vm8, %v543_v51 }
 0x17a   : > { %v534_v54 = vpop.f32.mrb[2].mxu1 }
 0x17b   : > { %v544_v55 = vadd.f32 %v534_v54, %v420_v53  ;;  %v724_v56 = vpop.f32.mrb[3].mxu1  ;;  %552 = sbr.rel (%p693_p5) target bundleno = 607 (0x25f), region = 44 }
 0x17c   : > { %v569_v1 = vld [vmem:[#allocation3 + $0x10] sm:$0xff] (!%p693_p5) }
 0x17d   : > { %547 = vst.msk [vmem:[#allocation4 + $0x8] sm:$0xff] %vm415_vm8, %v544_v55 }
 0x17e   : > { %v539_v58 = vpop.f32.mrb[4].mxu1 }
 0x17f   : > { %v545_v59 = vadd.f32 %v539_v58, %v421_v57  ;;  %v727_v60 = vpop.f32.mrb[5].mxu1 }
 0x180   : > { %v570_v2 = vld [vmem:[#allocation4] sm:$0xff] (!%p693_p5) }
 0x181   : > { %548 = vst.msk [vmem:[#allocation4 + $0x10] sm:$0xff] %vm415_vm8, %v545_v59  ;;  %v573_v5 = vmul.f32 (!%p693_p5), %v570_v2, %v567_v62 }
 0x183   : > { %v576_v8 = vsel %vm415_vm8, %v573_v5, 0.0 }
 0x184   : > { %v571_v3 = vld [vmem:[#allocation4 + $0x8] sm:$0xff] }
 0x185   : > { %v574_v6 = vmul.f32 %v571_v3, %v568_v63 }
 0x187   : > { %v577_v9 = vsel %vm415_vm8, %v574_v6, 0.0 }
 0x188   : > { %v572_v4 = vld [vmem:[#allocation4 + $0x10] sm:$0xff]  ;;  %v578_v10 = vadd.f32 %v577_v9, %v576_v8 }
 0x189   : > { %v575_v7 = vmul.f32 %v572_v4, %v569_v1 }
 0x18b   : > { %v579_v11 = vsel %vm415_vm8, %v575_v7, 0.0 }
 0x18c   : > { %v580_v12 = vadd.f32 %v579_v11, %v578_v10 }
 0x18e   : > { %581 = vadd.xlane.f32.xlu0 %v580_v12 }
 0x1ed   : > { %v556_v13 = vpop.xlane.xlu0 %555 }
 0x1ee   : > { %v557_v14 = vrot.slane %v556_v13, 4 }
 0x1f0   : > { %v558_v15 = vadd.f32 %v557_v14, %v556_v13 }
 0x1f2   : > { %v559_v16 = vrot.slane %v558_v15, 2 }
 0x1f4   : > { %v560_v18 = vadd.f32 %v559_v16, %v558_v15 }
 0x1f6   : > { %v561_v20 = vrot.slane %v560_v18, 1 }
 0x1f8   : > { %v562_v22 = vadd.f32 %v561_v20, %v560_v18 }
 0x1fa   : > { %728 = vpush %v562_v22 }
 0x21b   : > { %v582_v17 = vpop.xlane.xlu0 %581 }
 0x21c   : > { %v583_v19 = vrot.slane %v582_v17, 4 }
 0x21e   : > { %v584_v21 = vadd.f32 %v583_v19, %v582_v17 }
 0x220   : > { %v585_v23 = vrot.slane %v584_v21, 2 }
 0x222   : > { %v586_v24 = vadd.f32 %v585_v23, %v584_v21 }
 0x224   : > { %v587_v25 = vrot.slane %v586_v24, 1 }
 0x226   : > { %v588_v26 = vadd.f32 %v587_v25, %v586_v24 }
 0x228   : > { %730 = vpush %v588_v26 }
 0x22b   : > { %s729_s8 = spop %728 }
 0x22c   : > { %s566_s9 = smul.f32 0.05, %s729_s8 }
 0x259   : > { %s731_s10 = spop %730 }
 0x25a   : > { %s590_s11 = smul.f32 0.0001, %s731_s10 }
 0x25c   : > { %s591_s12 = sadd.f32 %s590_s11, %s566_s9 }
 0x25e   : > { %593 = sst [smem:[#allocation5]] %s591_s12 }
 0x25f PF: > { %p736_p6 = scmp.eq.s32.totalorder %s817_s16, 2  ;;  %s757_s17 = scalar_lea.hbm %s895_s4, 16 }
 0x260   : > { %p758_p7 = scmp.ne.s32.totalorder %s895_s4, %s757_s17  ;;  %p763_p10 = scmp.lt.u32.totalorder %s757_s17, %s895_s4 }
 0x262   : > { %p759_p8 = pnand %p758_p7, %p736_p6 }
 0x264   : > { %p760_p9 = pneg %p759_p8 }
 0x266   : > { %p765_p11 = pnand %p763_p10, %p760_p9 }
 0x268   : > { %768 = shalt.err (!%p765_p11)
}
 0x269   : > { %s785_s22 = smov [#allocation5]  }
 0x26a   : > { %733 = dma.smem_to_hbm (%p736_p6), %s785_s22, 16, %s895_s4, [#allocation6]  }
 0x26b   : > { %774 = dma.done.wait (%p736_p6), [#allocation6], 16  }
 0x26c   : > { %776 = vsyncadd (%p736_p6), [#allocation6], 4294967280 }
 0x26d   : > { %607 = sfence }
 0x26e PF: > { %s15_s15 = sadd.s32 1, %s779_s15  }
 0x26f   : > { %p12_p12 = scmp.ge.s32.totalorder %s15_s15, 5  }
 0x271   :  { %14 = sbr.rel (!%p12_p12) target bundleno = 1 (0x1), region = 81 }
 0x278   :  { %613 = vsyncpa [#allocation6], 1 }
 0x279   :  { %615 = vsyncpa [#allocation6 + $0x1], 1 }

</bundles_post_ra>
